<compile_context>
chip_gen: v7x
topology: tpu7x:2x2x1
jax: 0.10.0
libtpu: 0.0.40
codegen_flags: <defaults>
</compile_context>

<pallas_src>
import functools
from dataclasses import dataclass
from typing import Optional

import numpy as np
import jax
import jax.numpy as jnp
from jax import lax
from jax.experimental import pallas as pl
from jax.experimental.pallas import tpu as pltpu

NEG_INF = -1e30


# ----------------------------- RoPE kernel (neox style, scale folded into q) -----------------------------
def _rope_kernel(cos_ref, sin_ref, q_ref, k_ref, qo_ref, ko_ref,
                 *, r2, head_size, n_q_heads, n_k_heads, q_scale):
    cos = cos_ref[...]                      # [tT, D]   cos duplicated over both halves
    sin = sin_ref[...]                      # [tT, D]   [-sin, +sin] (neox sign baked in)
    D = head_size
    q = q_ref[...]                          # [tT, H*D]  lane/sublane dense slab
    k = k_ref[...]                          # [tT, KH*D]

    def rot(x):                             # x: [tT, D] -> x*cos + roll(x, D/2)*[-sin,+sin]
        return x * cos + pltpu.roll(x, shift=r2, axis=1) * sin

    for h in range(n_q_heads):              # static loop over 128-lane head slices
        sl = slice(h * D, (h + 1) * D)
        qo_ref[:, sl] = (rot(q[:, sl]) * q_scale).astype(qo_ref.dtype)
    for h in range(n_k_heads):
        sl = slice(h * D, (h + 1) * D)
        ko_ref[:, sl] = rot(k[:, sl]).astype(ko_ref.dtype)


def apply_rope(cos, sin, q, k, head_size, q_scale):
    # q: [T, H*D], k: [T, KH*D], cos/sin: [T, D]
    T, HD = q.shape
    KHD = k.shape[1]
    D = head_size
    r2 = D // 2

    tT = T
    for cand in (256, 128, 64, 32, 16, 8):
        if T % cand == 0:
            tT = cand
            break

    kern = functools.partial(_rope_kernel, r2=r2, head_size=D,
                             n_q_heads=HD // D, n_k_heads=KHD // D, q_scale=q_scale)
    return pl.pallas_call(
        kern,
        out_shape=(jax.ShapeDtypeStruct((T, HD), q.dtype),
                   jax.ShapeDtypeStruct((T, KHD), k.dtype)),
        grid=(T // tT,),
        in_specs=[pl.BlockSpec((tT, D), lambda i: (i, 0)),
                  pl.BlockSpec((tT, D), lambda i: (i, 0)),
                  pl.BlockSpec((tT, HD), lambda i: (i, 0)),
                  pl.BlockSpec((tT, KHD), lambda i: (i, 0))],
        out_specs=(pl.BlockSpec((tT, HD), lambda i: (i, 0)),
                   pl.BlockSpec((tT, KHD), lambda i: (i, 0))),
        compiler_params=pltpu.CompilerParams(dimension_semantics=("parallel",)),
    )(cos, sin, q, k)
    # TODO(synk): fully fuse RoPE into the attention / cache-write kernels to remove the
    # remaining q/k HBM round trip.


# ----------------------------- prompt (causal) flash attention, GQA folded -----------------------------
def _prompt_flash_kernel(q_ref, k_ref, v_ref, o_ref, m_sc, l_sc, acc_sc,
                         *, qpk, head_size):
    qi = pl.program_id(2)
    ki = pl.program_id(3)
    D = head_size

    @pl.when(ki == 0)
    def _init():
        m_sc[...] = jnp.full(m_sc.shape, NEG_INF, jnp.float32)
        l_sc[...] = jnp.zeros(l_sc.shape, jnp.float32)
        acc_sc[...] = jnp.zeros(acc_sc.shape, jnp.float32)

    def step(masked):
        q_all = q_ref[0]                    # [tq, qpk*D]   (q pre-scaled in the RoPE kernel)
        k = k_ref[0]                        # [tk, D]
        v = v_ref[0]                        # [tk, D]
        tq, tk = q_all.shape[0], k.shape[0]
        if masked:                          # only diagonal tiles pay for iota/where (VALU savings)
            row = qi * tq + lax.broadcasted_iota(jnp.int32, (tq, tk), 0)
            col = ki * tk + lax.broadcasted_iota(jnp.int32, (tq, tk), 1)
            keep = col <= row
        for g in range(qpk):                # GQA folded: reuse this K/V tile for all qpk heads
            qg = q_all[:, g * D:(g + 1) * D]
            s = lax.dot_general(qg, k, (((1,), (1,)), ((), ())),
                                preferred_element_type=jnp.float32)
            if masked:
                s = jnp.where(keep, s, NEG_INF)
            m_prev = m_sc[g]
            m_new = jnp.maximum(m_prev, jnp.max(s, axis=-1, keepdims=True))
            alpha = jnp.exp(m_prev - m_new)
            p = jnp.exp(s - m_new)
            l_sc[g] = alpha * l_sc[g] + jnp.sum(p, axis=-1, keepdims=True)
            acc_sc[:, g * D:(g + 1) * D] = (
                alpha * acc_sc[:, g * D:(g + 1) * D]
                + lax.dot_general(p.astype(v.dtype), v, (((1,), (0,)), ((), ())),
                                  preferred_element_type=jnp.float32))
            m_sc[g] = m_new

    @pl.when(ki < qi)                       # strictly below the diagonal: no masking work
    def _unmasked():
        step(masked=False)

    @pl.when(ki == qi)                      # diagonal tile: causal mask
    def _masked():
        step(masked=True)

    @pl.when(ki == pl.num_programs(3) - 1)
    def _finalize():
        for g in range(qpk):
            acc_sc[:, g * D:(g + 1) * D] = (acc_sc[:, g * D:(g + 1) * D] *
                                            pl.reciprocal(l_sc[g], approx=True))
        o_ref[0] = acc_sc[...].astype(o_ref.dtype)


def prompt_attention(q, k, v, num_heads, num_kv_heads, head_size):
    # q (rotated + pre-scaled): [B, S, H*D], k/v: [B, S, KH*D]  (module-native layout).
    B, S, _ = q.shape
    H, KH, D = num_heads, num_kv_heads, head_size
    qpk = H // KH
    # TODO(synk): head_size not a multiple of 128 needs a head-major [B,H,S,D] layout variant.
    assert D % 128 == 0, "lane-dense prompt kernel requires head_size % 128 == 0"

    # 256-wide tiles feed the 2x256^2 MXU on v6e/v7x; on v5e 128 is already optimal -- the
    # traffic fixes (causal dedup + GQA fold) dominate there.
    t = S
    for cand in (256, 128, 64, 32, 16, 8):
        if S % cand == 0:
            t = cand
            break
    n_tiles = S // t

    kern = functools.partial(_prompt_flash_kernel, qpk=qpk, head_size=D)
    return pl.pallas_call(
        kern,
        out_shape=jax.ShapeDtypeStruct((B, S, H * D), q.dtype),
        grid=(B, KH, n_tiles, n_tiles),
        in_specs=[
            pl.BlockSpec((1, t, qpk * D), lambda b, g, qi, ki: (b, qi, g)),
            # Clamp the kv block index: causally-skipped steps re-map to the resident block,
            # so Pallas issues no DMA for the upper triangle (~2x less K/V HBM traffic).
            pl.BlockSpec((1, t, D), lambda b, g, qi, ki: (b, jnp.minimum(ki, qi), g)),
            pl.BlockSpec((1, t, D), lambda b, g, qi, ki: (b, jnp.minimum(ki, qi), g)),
        ],
        out_specs=pl.BlockSpec((1, t, qpk * D), lambda b, g, qi, ki: (b, qi, g)),
        scratch_shapes=[pltpu.VMEM((qpk, t, 1), jnp.float32),
                        pltpu.VMEM((qpk, t, 1), jnp.float32),
                        pltpu.VMEM((t, qpk * D), jnp.float32)],
        compiler_params=pltpu.CompilerParams(
            dimension_semantics=("parallel", "parallel", "parallel", "arbitrary")),
    )(q, k, v)


# ----------------------------- reshape_and_cache (aliased DMA writeback) -----------------------------
_KV_WRITE_BUFS = 4       # DMA copies kept in flight per stream


def _kv_cache_write_kernel(slot_ref, k_ref, v_ref, kc_in, vc_in, kc_out, vc_out, sem,
                           *, block_size):
    del kc_in, vc_in                        # aliased with kc_out / vc_out
    num_tokens = k_ref.shape[0]
    nbuf = _KV_WRITE_BUFS

    def copies(t, slot):
        s = slot_ref[t]
        bi = s // block_size
        off = s % block_size
        ck = pltpu.make_async_copy(k_ref.at[t],
                                   kc_out.at[bi, :, :, pl.ds(off, 1), :],
                                   sem.at[0, slot])
        cv = pltpu.make_async_copy(v_ref.at[t],
                                   vc_out.at[bi, :, :, pl.ds(off, 1)],
                                   sem.at[1, slot])
        return ck, cv

    # Prime: up to nbuf-1 tokens in flight before the loop starts.
    for t in range(min(nbuf - 1, num_tokens)):
        ck, cv = copies(t, t % nbuf)
        ck.start(); cv.start()

    @pl.loop(0, num_tokens)
    def _(t):
        # Issue token t+nbuf-1 *before* waiting on token t -> nbuf-1 copies stay in flight.
        @pl.when(t + (nbuf - 1) < num_tokens)
        def _():
            tn = t + (nbuf - 1)
            ck, cv = copies(tn, tn % nbuf)
            ck.start(); cv.start()

        # Waits rebuild the exact started descriptors -> exact semaphore accounting.
        ck, cv = copies(t, t % nbuf)
        ck.wait(); cv.wait()
    # TODO(synk): coalescing tokens that hit the same cache block (and a lane-dense value
    # cache layout) would further cut per-token DMA descriptor overhead.


def write_kv_cache(key, value, key_cache, value_cache, slot_mapping):
    # key/value: [T, KH, D] (already rotated); caches keep the vLLM layouts.
    T, KH, D = key.shape
    x = key_cache.shape[4]
    block_size = value_cache.shape[3]
    k_src = key.reshape(T, KH, D // x, 1, x)
    v_src = value.reshape(T, KH, D, 1)

    kern = functools.partial(_kv_cache_write_kernel, block_size=block_size)
    return pl.pallas_call(
        kern,
        out_shape=(jax.ShapeDtypeStruct(key_cache.shape, key_cache.dtype),
                   jax.ShapeDtypeStruct(value_cache.shape, value_cache.dtype)),
        in_specs=[pl.BlockSpec(memory_space=pltpu.MemorySpace.SMEM),   # slot_mapping
                  pl.BlockSpec(memory_space=pl.ANY),                   # k_src (HBM)
                  pl.BlockSpec(memory_space=pl.ANY),                   # v_src (HBM)
                  pl.BlockSpec(memory_space=pl.ANY),                   # key_cache (aliased)
                  pl.BlockSpec(memory_space=pl.ANY)],                  # value_cache (aliased)
        out_specs=(pl.BlockSpec(memory_space=pl.ANY),
                   pl.BlockSpec(memory_space=pl.ANY)),
        scratch_shapes=[pltpu.SemaphoreType.DMA((2, _KV_WRITE_BUFS))],
        input_output_aliases={3: 0, 4: 1},
        compiler_params=pltpu.CompilerParams(has_side_effects=True),
    )(slot_mapping.astype(jnp.int32), k_src, v_src, key_cache, value_cache)


# ----------------------------- decode (paged cached-KV) attention -----------------------------
def _decode_attn_kernel(bt_ref, ctx_ref, q_ref, k_hbm, v_hbm, o_ref,
                        kbuf, vbuf, sem, m_sc, l_sc, acc_sc,
                        *, block_size, pages_per_fetch, n_buf, lookahead):
    n = pl.program_id(0)
    ctx = ctx_ref[n]
    bs = block_size
    G = pages_per_fetch
    J = G * bs                                  # kv tokens per compute step (lane-dense)
    n_pages = pl.cdiv(ctx, bs)
    n_sb = pl.cdiv(ctx, J)                      # super-blocks needed for this sequence

    def start_fetch(sb, slot):
        for g in range(G):                      # one page DMA per stream, assembled into one VMEM slab
            pg = jnp.minimum(sb * G + g, n_pages - 1)   # clamp padded tail to a valid page (masked later)
            p = bt_ref[n, pg]
            pltpu.make_async_copy(k_hbm.at[p],
                                  kbuf.at[slot, :, :, pl.ds(g * bs, bs), :],
                                  sem.at[0, slot]).start()
            pltpu.make_async_copy(v_hbm.at[p],
                                  vbuf.at[slot, :, :, pl.ds(g * bs, bs)],
                                  sem.at[1, slot]).start()

    def wait_fetch(slot):
        for g in range(G):                      # same shapes as started -> exact sem accounting
            pltpu.make_async_copy(k_hbm.at[0],
                                  kbuf.at[slot, :, :, pl.ds(g * bs, bs), :],
                                  sem.at[0, slot]).wait()
            pltpu.make_async_copy(v_hbm.at[0],
                                  vbuf.at[slot, :, :, pl.ds(g * bs, bs)],
                                  sem.at[1, slot]).wait()

    @pl.when(n_sb == 0)                         # padded / inactive sequence: no fetch, no finalize
    def _empty():
        o_ref[...] = jnp.zeros(o_ref.shape, o_ref.dtype)

    @pl.when(n_sb > 0)
    def _run():
        # Prime the pipeline: keep `lookahead` super-blocks in flight.
        @pl.loop(0, jnp.minimum(lookahead, n_sb))
        def _(i):
            start_fetch(i, i % n_buf)

        m_sc[...] = jnp.full(m_sc.shape, NEG_INF, jnp.float32)
        l_sc[...] = jnp.zeros(l_sc.shape, jnp.float32)
        acc_sc[...] = jnp.zeros(acc_sc.shape, jnp.float32)

        qf = q_ref[0]                           # [KH, D//x, qpk, x]  (pre-scaled by RoPE)
        KH, DX, QPK, X = qf.shape
        qf2 = qf.reshape(KH * DX, QPK, X)

        @pl.loop(0, n_sb)
        def _(i):
            slot = i % n_buf

            @pl.when(i + lookahead < n_sb)      # issue ahead *before* waiting on this slab
            def _():
                start_fetch(i + lookahead, (i + lookahead) % n_buf)

            wait_fetch(slot)

            # Scores against the x-factored key-cache layout, now lane-dense (N = J >= 128 typ.).
            # TODO(synk): the vLLM key-cache layout keeps K=x per matmul; a TPU-native layout
            # (or an in-VMEM relayout to [KH, J, D]) would fill the MXU properly.
            k4 = kbuf[slot]                     # [KH, DX, J, x]
            k2 = k4.reshape(KH * DX, J, X)
            qk = lax.dot_general(qf2, k2, (((2,), (2,)), ((0,), (0,))),
                                 preferred_element_type=jnp.float32)   # [KH*DX, qpk, J]
            s = qk.reshape(KH, DX, QPK, J).sum(axis=1)                  # [KH, qpk, J]

            pos = i * J + lax.broadcasted_iota(jnp.int32, s.shape, 2)
            s = jnp.where(pos < ctx, s, NEG_INF)

            m_prev = m_sc[...]
            m_new = jnp.maximum(m_prev, jnp.max(s, axis=-1, keepdims=True))
            alpha = jnp.exp(m_prev - m_new)
            p_ = jnp.exp(s - m_new)
            l_sc[...] = alpha * l_sc[...] + jnp.sum(p_, axis=-1, keepdims=True)

            v3 = vbuf[slot]                     # [KH, D, J]  (native value-cache layout)
            pv = lax.dot_general(p_.astype(v3.dtype), v3, (((2,), (2,)), ((0,), (0,))),
                                 preferred_element_type=jnp.float32)   # [KH, qpk, D]
            acc_sc[...] = alpha * acc_sc[...] + pv
            m_sc[...] = m_new

        o_ref[0] = (acc_sc[...] *
                    pl.reciprocal(l_sc[...], approx=True)).astype(o_ref.dtype)


def decode_attention(q, key_cache, value_cache, block_tables, context_lens):
    # q: [N, H, D]  (already rotated and pre-scaled by the RoPE kernel)
    N, H, D = q.shape
    _, KH, DX, bs, x = key_cache.shape
    qpk = H // KH
    max_pages = block_tables.shape[1]

    # Pages per fetch: make the per-step kv width >= 128 (lane-dense scores, amortized DMAs).
    G = min(max(1, -(-128 // bs)), max_pages)
    J = G * bs
    n_buf = 3                                    # super-block buffers; 2 fetches in flight
    lookahead = n_buf - 1

    # Tiny q rearrangement so the kernel consumes the x-factored key cache with batched matmuls.
    q_arr = q.reshape(N, KH, qpk, DX, x).transpose(0, 1, 3, 2, 4)    # [N, KH, DX, qpk, x]

    kern = functools.partial(_decode_attn_kernel, block_size=bs, pages_per_fetch=G,
                             n_buf=n_buf, lookahead=lookahead)
    out = pl.pallas_call(
        kern,
        out_shape=jax.ShapeDtypeStruct((N, KH, qpk, D), q.dtype),
        grid=(N,),
        in_specs=[pl.BlockSpec(memory_space=pltpu.MemorySpace.SMEM),   # block_tables
                  pl.BlockSpec(memory_space=pltpu.MemorySpace.SMEM),   # context_lens
                  pl.BlockSpec((1, KH, DX, qpk, x), lambda n: (n, 0, 0, 0, 0)),
                  pl.BlockSpec(memory_space=pl.ANY),                   # key_cache (HBM)
                  pl.BlockSpec(memory_space=pl.ANY)],                  # value_cache (HBM)
        out_specs=pl.BlockSpec((1, KH, qpk, D), lambda n: (n, 0, 0, 0)),
        scratch_shapes=[pltpu.VMEM((n_buf, KH, DX, J, x), key_cache.dtype),
                        pltpu.VMEM((n_buf, KH, D, J), value_cache.dtype),
                        pltpu.SemaphoreType.DMA((2, n_buf)),
                        pltpu.VMEM((KH, qpk, 1), jnp.float32),
                        pltpu.VMEM((KH, qpk, 1), jnp.float32),
                        pltpu.VMEM((KH, qpk, D), jnp.float32)],
        compiler_params=pltpu.CompilerParams(dimension_semantics=("parallel",)),
    )(block_tables.astype(jnp.int32), context_lens.astype(jnp.int32),
      q_arr, key_cache, value_cache)
    return out.reshape(N, H, D)


# ----------------------------- module wrapper -----------------------------
@dataclass
class InputMetadata:
    num_prompt_tokens: int = 0
    num_generation_tokens: int = 0
    num_prompts: int = 0
    max_prompt_len: int = 0
    slot_mapping: Optional[jnp.ndarray] = None
    block_tables: Optional[jnp.ndarray] = None
    context_lens: Optional[jnp.ndarray] = None
    max_context_len: int = 0
    to_cache: Optional[jnp.ndarray] = None


class PagedAttentionWithRoPE:
    def __init__(self, num_heads, head_size, scale, rotary_dim,
                 max_position=8192, base=10000, num_kv_heads=None):
        self.num_heads = num_heads
        self.head_size = head_size
        self.scale = float(scale)
        self.num_kv_heads = num_heads if num_kv_heads is None else num_kv_heads
        assert num_heads % self.num_kv_heads == 0
        self.num_queries_per_kv = num_heads // self.num_kv_heads
        # TODO(synk): partial rotation (rotary_dim < head_size) not implemented.
        assert rotary_dim == head_size

        inv_freq = 1.0 / (base ** (jnp.arange(0, rotary_dim, 2, dtype=jnp.float32) / rotary_dim))
        t = jnp.arange(max_position, dtype=jnp.float32)
        freqs = jnp.einsum('i,j->ij', t, inv_freq)              # [max_position, rotary_dim//2]
        self.cos_cache = jnp.cos(freqs)
        self.sin_cache = jnp.sin(freqs)
        # Lane-dense kernel tables: cos duplicated over both halves; sin with the neox
        # sign pattern baked in ([-sin, +sin]) so the RoPE kernel is one FMA + roll.
        self.cos_full = jnp.concatenate([self.cos_cache, self.cos_cache], axis=-1)
        self.sin_signed = jnp.concatenate([-self.sin_cache, self.sin_cache], axis=-1)

    def __call__(self, positions, query, key, value, key_cache, value_cache, input_metadata):
        B, S, _ = query.shape
        H, KH, D = self.num_heads, self.num_kv_heads, self.head_size
        T = B * S

        pos_flat = positions.reshape(T)
        cos = self.cos_full[pos_flat]                   # [T, D]
        sin = self.sin_signed[pos_flat]                 # [T, D]

        # RoPE on lane-dense [T, H*D] slabs; the attention scale is folded into q here so
        # the attention kernels never touch score tiles with a per-element scale.
        q2, k2 = apply_rope(cos, sin, query.reshape(T, H * D), key.reshape(T, KH * D),
                            D, self.scale)

        output = None

        # 1) prompt (multi-query causal) attention -- flash-style Pallas kernel, GQA folded.
        if input_metadata.num_prompt_tokens > 0:
            assert input_metadata.num_generation_tokens == 0
            output = prompt_attention(q2.reshape(B, S, H * D),
                                      k2.reshape(B, S, KH * D),
                                      value.reshape(B, S, KH * D),
                                      H, KH, D)                        # [B, S, H*D]

        # 2) reshape_and_cache: aliased Pallas DMA writeback (no full-cache scatter copy).
        if key_cache is not None and value_cache is not None:
            # TODO(synk): input_metadata.to_cache subsetting not implemented.
            slot_mapping = input_metadata.slot_mapping.reshape(-1)
            key_cache, value_cache = write_kv_cache(k2.reshape(T, KH, D),
                                                    value.reshape(T, KH, D),
                                                    key_cache, value_cache, slot_mapping)

        # 3) single-query cached-KV (paged) attention for generation tokens.
        if input_metadata.num_generation_tokens > 0:
            assert input_metadata.num_prompt_tokens == 0
            out_d = decode_attention(q2.reshape(T, H, D), key_cache, value_cache,
                                     input_metadata.block_tables,
                                     input_metadata.context_lens.astype(jnp.int32))
            output = out_d.reshape(B, S, H * D)

        return output, key_cache, value_cache


# ----------------------------- pure-JAX reference (for correctness check) -----------------------------
def _ref_rope(pos, x, cos_c, sin_c):
    r2 = cos_c.shape[-1]
    c = cos_c[pos][:, None, :]
    s = sin_c[pos][:, None, :]
    x1, x2 = x[..., :r2], x[..., r2:]
    return jnp.concatenate([x1 * c - x2 * s, x2 * c + x1 * s], axis=-1)


def _ref_attn(q, k, v, scale, mask):
    # q: [Lq, H, D]; k/v: [Lk, KH, D]; mask: [Lq, Lk] (True = keep)
    H = q.shape[1]
    KH = k.shape[1]
    if KH != H:
        k = jnp.repeat(k, H // KH, axis=1)
        v = jnp.repeat(v, H // KH, axis=1)
    s = jnp.einsum('qhd,khd->hqk', q * scale, k)
    s = jnp.where(mask[None], s, NEG_INF)
    p = jax.nn.softmax(s, axis=-1)
    return jnp.einsum('hqk,khd->qhd', p, v)


# ----------------------------- main -----------------------------
if __name__ == "__main__":
    num_heads = 4
    num_kv_heads = 2          # GQA: 2 query heads per KV head
    head_size = 128
    scale = head_size ** -0.5
    rotary_dim = head_size
    max_position = 64
    base = 10000
    block_size = 8
    num_blocks = 6
    x = 4                     # 16 bytes per f32 group (vLLM key-cache layout)

    B, S = 2, 8
    rng = jax.random.PRNGKey(0)
    r1, r2, r3, r4, r5, r6 = jax.random.split(rng, 6)
    q = jax.random.normal(r1, (B, S, num_heads * head_size), jnp.float32)
    k = jax.random.normal(r2, (B, S, num_kv_heads * head_size), jnp.float32)
    v = jax.random.normal(r3, (B, S, num_kv_heads * head_size), jnp.float32)
    positions = jnp.broadcast_to(jnp.arange(S, dtype=jnp.int32), (B, S))

    key_cache = jnp.zeros((num_blocks, num_kv_heads, head_size // x, block_size, x), jnp.float32)
    value_cache = jnp.zeros((num_blocks, num_kv_heads, head_size, block_size), jnp.float32)

    attn = PagedAttentionWithRoPE(num_heads, head_size, scale, rotary_dim,
                                  max_position, base, num_kv_heads)

    # -------- prompt phase --------  (seq 0 -> blocks {0,1}, seq 1 -> blocks {2,3})
    slot_mapping = jnp.stack([jnp.arange(S, dtype=jnp.int32),
                              jnp.arange(S, dtype=jnp.int32) + 2 * block_size])
    md_prompt = InputMetadata(num_prompt_tokens=B * S, num_prompts=B, max_prompt_len=S,
                              slot_mapping=slot_mapping)
    out_p, key_cache, value_cache = attn(positions, q, k, v, key_cache, value_cache, md_prompt)

    # -------- decode phase --------  (new token at position S; 2 pages per sequence)
    qd = jax.random.normal(r4, (B, 1, num_heads * head_size), jnp.float32)
    kd = jax.random.normal(r5, (B, 1, num_kv_heads * head_size), jnp.float32)
    vd = jax.random.normal(r6, (B, 1, num_kv_heads * head_size), jnp.float32)
    pos_d = jnp.full((B, 1), S, dtype=jnp.int32)
    slot_d = jnp.array([[S], [2 * block_size + S]], dtype=jnp.int32)     # slot 8 / slot 24
    block_tables = jnp.array([[0, 1], [2, 3]], dtype=jnp.int32)
    context_lens = jnp.array([S + 1, S + 1], dtype=jnp.int32)
    md_dec = InputMetadata(num_generation_tokens=B, slot_mapping=slot_d,
                           block_tables=block_tables, context_lens=context_lens,
                           max_context_len=S + 1)
    out_d, key_cache, value_cache = attn(pos_d, qd, kd, vd, key_cache, value_cache, md_dec)

    jax.block_until_ready((out_p, out_d, key_cache, value_cache))

    # -------- reference check (pure JAX, mirrors the torch CPU path) --------
    H, KH, D = num_heads, num_kv_heads, head_size

    # prompt
    q3r = _ref_rope(positions.reshape(-1), q.reshape(-1, H, D), attn.cos_cache, attn.sin_cache)
    k3r = _ref_rope(positions.reshape(-1), k.reshape(-1, KH, D), attn.cos_cache, attn.sin_cache)
    v3r = v.reshape(-1, KH, D)
    causal = jnp.tril(jnp.ones((S, S), bool))
    ref_p = []
    for b in range(B):
        qb = q3r[b * S:(b + 1) * S]
        kb = k3r[b * S:(b + 1) * S]
        vb = v3r[b * S:(b + 1) * S]
        ob = _ref_attn(qb, kb, vb, scale, causal)
        ref_p.append(ob.reshape(S, H * D))
    ref_p = jnp.stack(ref_p)
    np.testing.assert_allclose(np.asarray(out_p), np.asarray(ref_p), atol=2e-2, rtol=2e-2)

    # decode
    qd3 = _ref_rope(pos_d.reshape(-1), qd.reshape(-1, H, D), attn.cos_cache, attn.sin_cache)
    kd3 = _ref_rope(pos_d.reshape(-1), kd.reshape(-1, KH, D), attn.cos_cache, attn.sin_cache)
    vd3 = vd.reshape(-1, KH, D)
    ref_d = []
    for b in range(B):
        k_ctx = jnp.concatenate([k3r[b * S:(b + 1) * S], kd3[b:b + 1]], axis=0)
        v_ctx = jnp.concatenate([v3r[b * S:(b + 1) * S], vd3[b:b + 1]], axis=0)
        qb = qd3[b:b + 1]
        mask = jnp.ones((1, S + 1), bool)
        ob = _ref_attn(qb, k_ctx, v_ctx, scale, mask)
        ref_d.append(ob.reshape(1, H * D))
    ref_d = jnp.stack(ref_d)
    np.testing.assert_allclose(np.asarray(out_d), np.asarray(ref_d), atol=2e-2, rtol=2e-2)

    print("KERNEL_OK")
</pallas_src>

<mosaic_0001>
module attributes {stable_mosaic.version = 11 : i64} {
  func.func @_rope_kernel(%arg0: i32, %arg1: memref<16x128xf32, #tpu.memory_space<vmem>>, %arg2: memref<16x128xf32, #tpu.memory_space<vmem>>, %arg3: memref<16x512xf32, #tpu.memory_space<vmem>>, %arg4: memref<16x256xf32, #tpu.memory_space<vmem>>, %arg5: memref<16x512xf32, #tpu.memory_space<vmem>>, %arg6: memref<16x256xf32, #tpu.memory_space<vmem>>) attributes {dimension_semantics = [#tpu.dimension_semantics<parallel>], iteration_bounds = array<i64: 1>, scalar_prefetch = 0 : i64, scratch_operands = 0 : i64, tpu.core_type = #tpu.core_type<tc>, window_params = [{transform_indices = @transform_0, window_bounds = array<i64: 16, 128>}, {transform_indices = @transform_1, window_bounds = array<i64: 16, 128>}, {transform_indices = @transform_2, window_bounds = array<i64: 16, 512>}, {transform_indices = @transform_3, window_bounds = array<i64: 16, 256>}, {transform_indices = @transform_4, window_bounds = array<i64: 16, 512>}, {transform_indices = @transform_5, window_bounds = array<i64: 16, 256>}]} {
    %c0 = arith.constant 0 : index
    %c0_0 = arith.constant 0 : index
    %0 = vector.load %arg1[%c0, %c0_0] : memref<16x128xf32, #tpu.memory_space<vmem>>, vector<16x128xf32>
    %c0_1 = arith.constant 0 : index
    %c0_2 = arith.constant 0 : index
    %1 = vector.load %arg2[%c0_1, %c0_2] : memref<16x128xf32, #tpu.memory_space<vmem>>, vector<16x128xf32>
    %c0_3 = arith.constant 0 : index
    %c0_4 = arith.constant 0 : index
    %2 = vector.load %arg3[%c0_3, %c0_4] : memref<16x512xf32, #tpu.memory_space<vmem>>, vector<16x512xf32>
    %c0_5 = arith.constant 0 : index
    %c0_6 = arith.constant 0 : index
    %3 = vector.load %arg4[%c0_5, %c0_6] : memref<16x256xf32, #tpu.memory_space<vmem>>, vector<16x256xf32>
    %4 = vector.extract_strided_slice %2 {offsets = [0, 0], sizes = [16, 128], strides = [1, 1]} : vector<16x512xf32> to vector<16x128xf32>
    %5 = arith.mulf %4, %0 : vector<16x128xf32>
    %c64_i32 = arith.constant 64 : i32
    %6 = tpu.dynamic_rotate %4 by %c64_i32 dim 1 : vector<16x128xf32>, i32 -> vector<16x128xf32>
    %7 = arith.mulf %6, %1 : vector<16x128xf32>
    %8 = arith.addf %5, %7 : vector<16x128xf32>
    %cst = arith.constant 0.0883883461 : f32
    %9 = vector.broadcast %cst : f32 to vector<16x128xf32>
    %10 = arith.mulf %8, %9 : vector<16x128xf32>
    %c0_7 = arith.constant 0 : index
    %c0_8 = arith.constant 0 : index
    %11 = vector.load %arg5[%c0_7, %c0_8] : memref<16x512xf32, #tpu.memory_space<vmem>>, vector<16x128xf32>
    tpu.vector_store %arg5[%c0_7, %c0_8], %10 {strides = array<i32>} : memref<16x512xf32, #tpu.memory_space<vmem>>, vector<16x128xf32>,
    %12 = vector.extract_strided_slice %2 {offsets = [0, 128], sizes = [16, 128], strides = [1, 1]} : vector<16x512xf32> to vector<16x128xf32>
    %13 = arith.mulf %12, %0 : vector<16x128xf32>
    %c64_i32_9 = arith.constant 64 : i32
    %14 = tpu.dynamic_rotate %12 by %c64_i32_9 dim 1 : vector<16x128xf32>, i32 -> vector<16x128xf32>
    %15 = arith.mulf %14, %1 : vector<16x128xf32>
    %16 = arith.addf %13, %15 : vector<16x128xf32>
    %cst_10 = arith.constant 0.0883883461 : f32
    %17 = vector.broadcast %cst_10 : f32 to vector<16x128xf32>
    %18 = arith.mulf %16, %17 : vector<16x128xf32>
    %c0_11 = arith.constant 0 : index
    %c128 = arith.constant 128 : index
    %19 = vector.load %arg5[%c0_11, %c128] : memref<16x512xf32, #tpu.memory_space<vmem>>, vector<16x128xf32>
    tpu.vector_store %arg5[%c0_11, %c128], %18 {strides = array<i32>} : memref<16x512xf32, #tpu.memory_space<vmem>>, vector<16x128xf32>,
    %20 = vector.extract_strided_slice %2 {offsets = [0, 256], sizes = [16, 128], strides = [1, 1]} : vector<16x512xf32> to vector<16x128xf32>
    %21 = arith.mulf %20, %0 : vector<16x128xf32>
    %c64_i32_12 = arith.constant 64 : i32
    %22 = tpu.dynamic_rotate %20 by %c64_i32_12 dim 1 : vector<16x128xf32>, i32 -> vector<16x128xf32>
    %23 = arith.mulf %22, %1 : vector<16x128xf32>
    %24 = arith.addf %21, %23 : vector<16x128xf32>
    %cst_13 = arith.constant 0.0883883461 : f32
    %25 = vector.broadcast %cst_13 : f32 to vector<16x128xf32>
    %26 = arith.mulf %24, %25 : vector<16x128xf32>
    %c0_14 = arith.constant 0 : index
    %c256 = arith.constant 256 : index
    %27 = vector.load %arg5[%c0_14, %c256] : memref<16x512xf32, #tpu.memory_space<vmem>>, vector<16x128xf32>
    tpu.vector_store %arg5[%c0_14, %c256], %26 {strides = array<i32>} : memref<16x512xf32, #tpu.memory_space<vmem>>, vector<16x128xf32>,
    %28 = vector.extract_strided_slice %2 {offsets = [0, 384], sizes = [16, 128], strides = [1, 1]} : vector<16x512xf32> to vector<16x128xf32>
    %29 = arith.mulf %28, %0 : vector<16x128xf32>
    %c64_i32_15 = arith.constant 64 : i32
    %30 = tpu.dynamic_rotate %28 by %c64_i32_15 dim 1 : vector<16x128xf32>, i32 -> vector<16x128xf32>
    %31 = arith.mulf %30, %1 : vector<16x128xf32>
    %32 = arith.addf %29, %31 : vector<16x128xf32>
    %cst_16 = arith.constant 0.0883883461 : f32
    %33 = vector.broadcast %cst_16 : f32 to vector<16x128xf32>
    %34 = arith.mulf %32, %33 : vector<16x128xf32>
    %c0_17 = arith.constant 0 : index
    %c384 = arith.constant 384 : index
    %35 = vector.load %arg5[%c0_17, %c384] : memref<16x512xf32, #tpu.memory_space<vmem>>, vector<16x128xf32>
    tpu.vector_store %arg5[%c0_17, %c384], %34 {strides = array<i32>} : memref<16x512xf32, #tpu.memory_space<vmem>>, vector<16x128xf32>,
    %36 = vector.extract_strided_slice %3 {offsets = [0, 0], sizes = [16, 128], strides = [1, 1]} : vector<16x256xf32> to vector<16x128xf32>
    %37 = arith.mulf %36, %0 : vector<16x128xf32>
    %c64_i32_18 = arith.constant 64 : i32
    %38 = tpu.dynamic_rotate %36 by %c64_i32_18 dim 1 : vector<16x128xf32>, i32 -> vector<16x128xf32>
    %39 = arith.mulf %38, %1 : vector<16x128xf32>
    %40 = arith.addf %37, %39 : vector<16x128xf32>
    %c0_19 = arith.constant 0 : index
    %c0_20 = arith.constant 0 : index
    %41 = vector.load %arg6[%c0_19, %c0_20] : memref<16x256xf32, #tpu.memory_space<vmem>>, vector<16x128xf32>
    tpu.vector_store %arg6[%c0_19, %c0_20], %40 {strides = array<i32>} : memref<16x256xf32, #tpu.memory_space<vmem>>, vector<16x128xf32>,
    %42 = vector.extract_strided_slice %3 {offsets = [0, 128], sizes = [16, 128], strides = [1, 1]} : vector<16x256xf32> to vector<16x128xf32>
    %43 = arith.mulf %42, %0 : vector<16x128xf32>
    %c64_i32_21 = arith.constant 64 : i32
    %44 = tpu.dynamic_rotate %42 by %c64_i32_21 dim 1 : vector<16x128xf32>, i32 -> vector<16x128xf32>
    %45 = arith.mulf %44, %1 : vector<16x128xf32>
    %46 = arith.addf %43, %45 : vector<16x128xf32>
    %c0_22 = arith.constant 0 : index
    %c128_23 = arith.constant 128 : index
    %47 = vector.load %arg6[%c0_22, %c128_23] : memref<16x256xf32, #tpu.memory_space<vmem>>, vector<16x128xf32>
    tpu.vector_store %arg6[%c0_22, %c128_23], %46 {strides = array<i32>} : memref<16x256xf32, #tpu.memory_space<vmem>>, vector<16x128xf32>,
    return
  }
  func.func @transform_0(%arg0: i32) -> (i32, i32) {
    %c0_i32 = arith.constant 0 : i32
    %c0_i32_0 = arith.constant 0 : i32
    return %arg0, %c0_i32 : i32, i32
  }
  func.func @transform_1(%arg0: i32) -> (i32, i32) {
    %c0_i32 = arith.constant 0 : i32
    %c0_i32_0 = arith.constant 0 : i32
    return %arg0, %c0_i32 : i32, i32
  }
  func.func @transform_2(%arg0: i32) -> (i32, i32) {
    %c0_i32 = arith.constant 0 : i32
    %c0_i32_0 = arith.constant 0 : i32
    return %arg0, %c0_i32 : i32, i32
  }
  func.func @transform_3(%arg0: i32) -> (i32, i32) {
    %c0_i32 = arith.constant 0 : i32
    %c0_i32_0 = arith.constant 0 : i32
    return %arg0, %c0_i32 : i32, i32
  }
  func.func @transform_4(%arg0: i32) -> (i32, i32) {
    %c0_i32 = arith.constant 0 : i32
    %c0_i32_0 = arith.constant 0 : i32
    return %arg0, %c0_i32 : i32, i32
  }
  func.func @transform_5(%arg0: i32) -> (i32, i32) {
    %c0_i32 = arith.constant 0 : i32
    %c0_i32_0 = arith.constant 0 : i32
    return %arg0, %c0_i32 : i32, i32
  }
}

</mosaic_0001>

<bundles_post_ra>
// kernel: tpu_custom_call.1
= control target key start
LH: loop header
LB: loop body
LE: loop exit
PB: predicated region body
PF: predicated region fallthrough
CT: control target
= control target key end

     0   :  { %11 = vsyncpa [#allocation3], 0  ;;  %s520_s0 = inlined_call_operand.hbm [shape: f32[16,128], index: 0, kind: input, shape index: {}]   ;;  %s521_s1 = inlined_call_operand.hbm [shape: f32[16,128], index: 1, kind: input, shape index: {}]   ;;  %s522_s2 = inlined_call_operand.hbm [shape: f32[16,512], index: 2, kind: input, shape index: {}]   ;;  %s523_s3 = inlined_call_operand.hbm [shape: f32[16,256], index: 3, kind: input, shape index: {}]   ;;  %s524_s4 = inlined_call_operand.hbm [shape: f32[16,512], index: 4, kind: output, shape index: {0}]   ;;  %s525_s5 = inlined_call_operand.hbm [shape: f32[16,256], index: 5, kind: output, shape index: {1}]  }
   0x1   :  { %12 = vsyncpa [#allocation6], 0 }
   0x2   :  { %13 = vsyncpa [#allocation9], 0 }
   0x3   :  { %14 = vsyncpa [#allocation4], 0 }
   0x4   :  { %15 = vsyncpa [#allocation12], 0  ;;  %s362_s18 = smov [#allocation5]   ;;  %s363_s20 = smov [#allocation2]  }
   0x5   :  { %s33_s19 = sshll.u32 %s362_s18, 4  ;;  %s21_s21 = sshll.u32 %s363_s20, 4  ;;  %s34_s19 = int_to_ptr.vmem [resolvable:$true] %s33_s19  ;;  %s405_s21 = int_to_ptr.vmem [resolvable:$true] %s21_s21 }
   0x6   :  { %s220_s24 = scalar_lea.hbm %s521_s1, 256 }
   0x7   :  { %p221_p0 = scmp.ne.s32.totalorder %s521_s1, %s220_s24  ;;  %p224_p1 = scmp.lt.u32.totalorder %s220_s24, %s521_s1 }
   0x9   :  { %p226_p2 = pnand %p224_p1, %p221_p0 }
   0xb   :  { %229 = shalt.err (!%p226_p2)
}
   0xc   :  { %s230_s29 = scalar_lea.vmem %s34_s19, 256  ;;  %p235_p4 = scmp.lt.s32.totalorder %s34_s19, %s34_s19 }
   0xd   :  { %p231_p3 = scmp.ne.s32.totalorder %s34_s19, %s230_s29  ;;  %p236_p5 = scmp.lt.s32.totalorder %s230_s29, %s230_s29 }
   0xf   :  { %p237_p6 = por %p236_p5, %p235_p4 }
  0x11   :  { %p238_p7 = pnand %p237_p6, %p231_p3 }
  0x13   :  { %241 = shalt.err (!%p238_p7)
}
  0x14   :  { %s364_s30 = smov 128   ;;  %s365_s6 = smov 8  }
  0x15   :  { %39 = dma.hbm_to_vmem [thread:$0]  %s521_s1, 256, %s34_s19, [#allocation6], %s364_s30, %s364_s30, %s365_s6  }
  0x16   :  { %s242_s11 = scalar_lea.hbm %s520_s0, 256 }
  0x17   :  { %p243_p8 = scmp.ne.s32.totalorder %s520_s0, %s242_s11  ;;  %p246_p9 = scmp.lt.u32.totalorder %s242_s11, %s520_s0 }
  0x19   :  { %p248_p10 = pnand %p246_p9, %p243_p8 }
  0x1b   :  { %251 = shalt.err (!%p248_p10)
}
  0x1c   :  { %s252_s16 = scalar_lea.vmem %s405_s21, 256  ;;  %p257_p12 = scmp.lt.s32.totalorder %s405_s21, %s405_s21 }
  0x1d   :  { %p253_p11 = scmp.ne.s32.totalorder %s405_s21, %s252_s16  ;;  %p258_p13 = scmp.lt.s32.totalorder %s252_s16, %s252_s16 }
  0x1f   :  { %p259_p0 = por %p258_p13, %p257_p12 }
  0x21   :  { %p260_p1 = pnand %p259_p0, %p253_p11 }
  0x23   :  { %263 = shalt.err (!%p260_p1)
}
  0x24   :  { %27 = dma.hbm_to_vmem [thread:$0]  %s520_s0, 256, %s405_s21, [#allocation3], %s364_s30, %s364_s30, %s365_s6  }
  0x25   :  { %s366_s18 = smov [#allocation7]   ;;  %s264_s23 = scalar_lea.hbm %s522_s2, 1024 }
  0x26   :  { %s45_s19 = sshll.u32 %s366_s18, 4  ;;  %p265_p2 = scmp.ne.s32.totalorder %s522_s2, %s264_s23  ;;  %s46_s19 = int_to_ptr.vmem [resolvable:$true] %s45_s19 }
  0x27   :  { %p268_p3 = scmp.lt.u32.totalorder %s264_s23, %s522_s2 }
  0x29   :  { %p270_p4 = pnand %p268_p3, %p265_p2 }
  0x2b   :  { %273 = shalt.err (!%p270_p4)
}
  0x2c   :  { %s274_s28 = scalar_lea.vmem %s46_s19, 1024  ;;  %p279_p6 = scmp.lt.s32.totalorder %s46_s19, %s46_s19 }
  0x2d   :  { %p275_p5 = scmp.ne.s32.totalorder %s46_s19, %s274_s28  ;;  %p280_p7 = scmp.lt.s32.totalorder %s274_s28, %s274_s28 }
  0x2f   :  { %p281_p8 = por %p280_p7, %p279_p6 }
  0x31   :  { %p282_p9 = pnand %p281_p8, %p275_p5 }
  0x33   :  { %285 = shalt.err (!%p282_p9)
}
  0x34   :  { %s367_s0 = smov 512   ;;  %s368_s21 = smov 32  }
  0x35   :  { %51 = dma.hbm_to_vmem [thread:$0]  %s522_s2, 1024, %s46_s19, [#allocation6], %s367_s0, %s367_s0, %s368_s21  }
  0x36   :  { %s369_s6 = smov [#allocation8]   ;;  %s286_s10 = scalar_lea.hbm %s523_s3, 512 }
  0x37   :  { %s57_s7 = sshll.u32 %s369_s6, 4  ;;  %p287_p10 = scmp.ne.s32.totalorder %s523_s3, %s286_s10  ;;  %s58_s7 = int_to_ptr.vmem [resolvable:$true] %s57_s7 }
  0x38   :  { %p290_p11 = scmp.lt.u32.totalorder %s286_s10, %s523_s3 }
  0x3a   :  { %p292_p12 = pnand %p290_p11, %p287_p10 }
  0x3c   :  { %295 = shalt.err (!%p292_p12)
}
  0x3d   :  { %s296_s15 = scalar_lea.vmem %s58_s7, 512  ;;  %p301_p0 = scmp.lt.s32.totalorder %s58_s7, %s58_s7 }
  0x3e   :  { %p297_p13 = scmp.ne.s32.totalorder %s58_s7, %s296_s15  ;;  %p302_p1 = scmp.lt.s32.totalorder %s296_s15, %s296_s15 }
  0x40   :  { %p303_p2 = por %p302_p1, %p301_p0 }
  0x42   :  { %p304_p3 = pnand %p303_p2, %p297_p13 }
  0x44   :  { %307 = shalt.err (!%p304_p3)
}
  0x45   :  { %s370_s2 = smov 256   ;;  %s371_s16 = smov 16  }
  0x46   :  { %63 = dma.hbm_to_vmem [thread:$0]  %s523_s3, 512, %s58_s7, [#allocation9], %s370_s2, %s370_s2, %s371_s16  }
  0x47   :  { %352 = dma.done.wait [#allocation3], 256  }
  0x48   :  { %353 = vsyncadd [#allocation3], 4294967040 }
  0x49   :  { %354 = dma.done.wait [#allocation6], 1280  }
  0x4a   :  { %355 = vsyncadd [#allocation6], 4294966016 }
  0x4b   :  { %356 = dma.done.wait [#allocation9], 512  }
  0x4c   :  { %357 = vsyncadd [#allocation9], 4294966784  ;;  %v81_v0 = vld [vmem:[#allocation7 + $0x8] sm:$0xff]  ;;  %v80_v1 = vld [vmem:[#allocation7] sm:$0xff]  ;;  %s372_s18 = smov 64   ;;  %s373_s3 = smov [#allocation10]  }
  0x4d   :  { %108 = vrot.lane.b32.xlu1 %v81_v0, %s372_s18  ;;  %94 = vrot.lane.b32.xlu0 %v80_v1, %s372_s18  ;;  %v85_v2 = vld [vmem:[#allocation7 + $0x28] sm:$0xff]  ;;  %v84_v3 = vld [vmem:[#allocation7 + $0x20] sm:$0xff]  ;;  %v86_v4 = vld [vmem:[#allocation7 + $0x30] sm:$0xff]  ;;  %s177_s19 = sshll.u32 %s373_s3, 4  ;;  %s374_s20 = smov [#allocation11]   ;;  %s178_s19 = int_to_ptr.vmem [resolvable:$true] %s177_s19 }
  0x4e   :  { %v82_v5 = vld [vmem:[#allocation7 + $0x10] sm:$0xff]  ;;  %v87_v6 = vld [vmem:[#allocation7 + $0x38] sm:$0xff]  ;;  %v88_v9 = vld [vmem:[#allocation8] sm:$0xff]  ;;  %s189_s22 = sshll.u32 %s374_s20, 4  ;;  %s308_s23 = scalar_lea.vmem %s178_s19, 1024  ;;  %s190_s22 = int_to_ptr.vmem [resolvable:$true] %s189_s22 }
  0x4f   :  { %v83_v7 = vld [vmem:[#allocation7 + $0x18] sm:$0xff]  ;;  %v90_v8 = vld [vmem:[#allocation8 + $0x10] sm:$0xff]  ;;  %v468_v11 = vld [vmem:[#allocation8 + $0x8] sm:$0xff]  ;;  %p309_p4 = scmp.ne.s32.totalorder %s178_s19, %s308_s23  ;;  %p313_p5 = scmp.lt.s32.totalorder %s178_s19, %s178_s19 }
  0x50   :  { %v466_v10 = vld [vmem:[#allocation8 + $0x18] sm:$0xff]  ;;  %v76_v12 = vld [vmem:[#allocation2] sm:$0xff]  ;;  %v472_v13 = vld [vmem:[#allocation5] sm:$0xff]  ;;  %p314_p6 = scmp.lt.s32.totalorder %s308_s23, %s308_s23 }
  0x51   :  { %110 = vrot.lane.b32.xlu1 %v85_v2, %s372_s18  ;;  %96 = vrot.lane.b32.xlu0 %v84_v3, %s372_s18  ;;  %v106_v14 = vmul.f32 %v81_v0, %v76_v12  ;;  %v92_v15 = vmul.f32 %v80_v1, %v76_v12  ;;  %v77_v16 = vld [vmem:[#allocation2 + $0x8] sm:$0xff]  ;;  %v476_v21 = vld [vmem:[#allocation5 + $0x8] sm:$0xff]  ;;  %v120_v33 = vmul.f32 %v82_v5, %v76_v12 }
  0x52   :  { %v107_v22 = vmul.f32 %v85_v2, %v77_v16  ;;  %v93_v23 = vmul.f32 %v84_v3, %v77_v16  ;;  %v121_v32 = vmul.f32 %v86_v4, %v77_v16  ;;  %v135_v42 = vmul.f32 %v87_v6, %v77_v16  ;;  %p315_p7 = por %p314_p6, %p313_p5 }
  0x53   :  { %v134_v43 = vmul.f32 %v83_v7, %v76_v12  ;;  %v149_v52 = vmul.f32 %v90_v8, %v77_v16  ;;  %v148_v53 = vmul.f32 %v88_v9, %v76_v12  ;;  %v161_v62 = vmul.f32 %v466_v10, %v77_v16 }
  0x54   :  { %v160_v63 = vmul.f32 %v468_v11, %v76_v12  ;;  %p316_p8 = pnand %p315_p7, %p309_p4 }
  0x55   :  { %124 = vrot.lane.b32.xlu1 %v86_v4, %s372_s18  ;;  %122 = vrot.lane.b32.xlu0 %v82_v5, %s372_s18 }
  0x59   :  { %138 = vrot.lane.b32.xlu1 %v87_v6, %s372_s18  ;;  %136 = vrot.lane.b32.xlu0 %v83_v7, %s372_s18 }
  0x5d   :  { %152 = vrot.lane.b32.xlu1 %v90_v8, %s372_s18  ;;  %150 = vrot.lane.b32.xlu0 %v88_v9, %s372_s18 }
  0x61   :  { %164 = vrot.lane.b32.xlu1 %v466_v10, %s372_s18  ;;  %162 = vrot.lane.b32.xlu0 %v468_v11, %s372_s18 }
  0xbf   :  { %v109_v17 = vpop.permute.xlu1 %108  ;;  %v95_v18 = vpop.permute.xlu0 %94 }
  0xc0   :  { %v112_v19 = vmul.f32 %v109_v17, %v472_v13  ;;  %v98_v20 = vmul.f32 %v95_v18, %v472_v13 }
  0xc2   :  { %v114_v24 = vadd.f32 %v112_v19, %v106_v14  ;;  %v100_v25 = vadd.f32 %v98_v20, %v92_v15 }
  0xc3   :  { %v111_v26 = vpop.permute.xlu1 %110  ;;  %v97_v27 = vpop.permute.xlu0 %96 }
  0xc4   :  { %v116_v28 = vmul.f32 0.088388346, %v114_v24  ;;  %v102_v29 = vmul.f32 0.088388346, %v100_v25  ;;  %v113_v30 = vmul.f32 %v111_v26, %v476_v21  ;;  %v99_v31 = vmul.f32 %v97_v27, %v476_v21 }
  0xc6   :  { %118 = vst [vmem:[#allocation10 + $0x8] sm:$0xff] %v116_v28  ;;  %104 = vst [vmem:[#allocation10] sm:$0xff] %v102_v29  ;;  %v115_v34 = vadd.f32 %v113_v30, %v107_v22  ;;  %v101_v35 = vadd.f32 %v99_v31, %v93_v23 }
  0xc7   :  { %v125_v36 = vpop.permute.xlu1 %124  ;;  %v123_v37 = vpop.permute.xlu0 %122 }
  0xc8   :  { %v117_v38 = vmul.f32 0.088388346, %v115_v34  ;;  %v103_v39 = vmul.f32 0.088388346, %v101_v35  ;;  %v127_v40 = vmul.f32 %v125_v36, %v476_v21  ;;  %v126_v41 = vmul.f32 %v123_v37, %v472_v13 }
  0xca   :  { %119 = vst [vmem:[#allocation10 + $0x28] sm:$0xff] %v117_v38  ;;  %105 = vst [vmem:[#allocation10 + $0x20] sm:$0xff] %v103_v39  ;;  %v129_v44 = vadd.f32 %v127_v40, %v121_v32  ;;  %v128_v45 = vadd.f32 %v126_v41, %v120_v33 }
  0xcb   :  { %v139_v46 = vpop.permute.xlu1 %138  ;;  %v137_v47 = vpop.permute.xlu0 %136 }
  0xcc   :  { %v131_v48 = vmul.f32 0.088388346, %v129_v44  ;;  %v130_v49 = vmul.f32 0.088388346, %v128_v45  ;;  %v141_v50 = vmul.f32 %v139_v46, %v476_v21  ;;  %v140_v51 = vmul.f32 %v137_v47, %v472_v13 }
  0xce   :  { %133 = vst [vmem:[#allocation10 + $0x30] sm:$0xff] %v131_v48  ;;  %132 = vst [vmem:[#allocation10 + $0x10] sm:$0xff] %v130_v49  ;;  %v143_v54 = vadd.f32 %v141_v50, %v135_v42  ;;  %v142_v55 = vadd.f32 %v140_v51, %v134_v43 }
  0xcf   :  { %v153_v56 = vpop.permute.xlu1 %152  ;;  %v151_v57 = vpop.permute.xlu0 %150 }
  0xd0   :  { %v145_v58 = vmul.f32 0.088388346, %v143_v54  ;;  %v144_v59 = vmul.f32 0.088388346, %v142_v55  ;;  %v155_v60 = vmul.f32 %v153_v56, %v476_v21  ;;  %v154_v61 = vmul.f32 %v151_v57, %v472_v13 }
  0xd2   :  { %147 = vst [vmem:[#allocation10 + $0x38] sm:$0xff] %v145_v58  ;;  %146 = vst [vmem:[#allocation10 + $0x18] sm:$0xff] %v144_v59  ;;  %v157_v0 = vadd.f32 %v155_v60, %v149_v52  ;;  %v156_v1 = vadd.f32 %v154_v61, %v148_v53 }
  0xd3   :  { %v165_v2 = vpop.permute.xlu1 %164  ;;  %v163_v3 = vpop.permute.xlu0 %162 }
  0xd4   :  { %319 = shalt.err (!%p316_p8)
}
  0xd5   :  { %s320_s26 = scalar_lea.hbm %s524_s4, 1024 }
  0xd6   :  { %p321_p9 = scmp.ne.s32.totalorder %s524_s4, %s320_s26  ;;  %p324_p10 = scmp.lt.u32.totalorder %s320_s26, %s524_s4 }
  0xd8   :  { %p326_p11 = pnand %p324_p10, %p321_p9 }
  0xda   :  { %329 = shalt.err (!%p326_p11)
}
  0xdb   :  { %183 = dma.vmem_to_hbm [thread:$0]  %s178_s19, 1024, %s524_s4, [#allocation4], %s367_s0, %s367_s0, %s368_s21   ;;  %159 = vst [vmem:[#allocation11 + $0x10] sm:$0xff] %v157_v0  ;;  %158 = vst [vmem:[#allocation11] sm:$0xff] %v156_v1  ;;  %v167_v4 = vmul.f32 %v165_v2, %v476_v21  ;;  %v166_v5 = vmul.f32 %v163_v3, %v472_v13 }
  0xdc   :  { %s330_s8 = scalar_lea.vmem %s190_s22, 512  ;;  %p335_p13 = scmp.lt.s32.totalorder %s190_s22, %s190_s22 }
  0xdd   :  { %v169_v6 = vadd.f32 %v167_v4, %v161_v62  ;;  %v168_v7 = vadd.f32 %v166_v5, %v160_v63  ;;  %p331_p12 = scmp.ne.s32.totalorder %s190_s22, %s330_s8  ;;  %p336_p0 = scmp.lt.s32.totalorder %s330_s8, %s330_s8 }
  0xdf   :  { %171 = vst [vmem:[#allocation11 + $0x18] sm:$0xff] %v169_v6  ;;  %170 = vst [vmem:[#allocation11 + $0x8] sm:$0xff] %v168_v7  ;;  %p337_p1 = por %p336_p0, %p335_p13 }
  0xe1   :  { %p338_p2 = pnand %p337_p1, %p331_p12 }
  0xe3   :  { %341 = shalt.err (!%p338_p2)
}
  0xe4   :  { %s342_s0 = scalar_lea.hbm %s525_s5, 512 }
  0xe5   :  { %p343_p3 = scmp.ne.s32.totalorder %s525_s5, %s342_s0  ;;  %p346_p4 = scmp.lt.u32.totalorder %s342_s0, %s525_s5 }
  0xe7   :  { %p348_p5 = pnand %p346_p4, %p343_p3 }
  0xe9   :  { %351 = shalt.err (!%p348_p5)
}
  0xea   :  { %195 = dma.vmem_to_hbm [thread:$0]  %s190_s22, 512, %s525_s5, [#allocation12], %s370_s2, %s370_s2, %s371_s16  }
  0xeb   :  { %358 = dma.done.wait [#allocation4], 1024  }
  0xec   :  { %359 = vsyncadd [#allocation4], 4294966272 }
  0xed   :  { %360 = dma.done.wait [#allocation12], 512  }
  0xee   :  { %361 = vsyncadd [#allocation12], 4294966784 }
  0xef   :  { %202 = vsyncpa [#allocation3], 1 }
  0xf0   :  { %203 = vsyncpa [#allocation6], 1 }
  0xf1   :  { %204 = vsyncpa [#allocation9], 1 }
  0xf2   :  { %205 = vsyncpa [#allocation4], 1 }
  0xf3   :  { %206 = vsyncpa [#allocation12], 1 }

</bundles_post_ra>
